<compile_context>
chip_gen: v7x
topology: tpu7x:2x2x1
jax: 0.10.0
libtpu: 0.0.40
codegen_flags: <defaults>
</compile_context>

<pallas_src>
import math

import jax
import jax.numpy as jnp
from jax import lax
from jax.experimental import pallas as pl
from jax.experimental.pallas import tpu as pltpu

INPUT_SIZE = 5
HIDDEN_SIZE = 32
OUTPUT_SIZE = 1
NUM_LAYERS = 2          # number of hidden Linear layers (as in the PyTorch module)

DEFAULT_TB = 32768      # batch tile on the lane axis (multiple of CHUNK)
CHUNK = 1024            # inner lane-chunk size; (32, CHUNK) f32 intermediates ~128 KB


def mlp_kernel(x_ref, w1_ref, b1_ref, w2_ref, b2_ref, wo_ref, bo_ref, o_ref):
    # x_ref: (INPUT_SIZE, tb) bf16 -- batch on the lane axis. o_ref: (OUTPUT_SIZE, tb) f32.
    tb = x_ref.shape[1]
    chunk = min(CHUNK, tb)          # static; wrapper guarantees tb % chunk == 0
    n_chunks = tb // chunk

    # Resident weights/biases: load + broadcast once per tile, outside the loop
    # (JAX does not CSE broadcast_in_dim inside loops).
    w1 = w1_ref[...]                                            # (H, IN)  bf16
    w2 = w2_ref[...]                                            # (H, H)   bf16
    wo = wo_ref[...]                                            # (O, H)   bf16
    b1 = jnp.broadcast_to(b1_ref[...], (HIDDEN_SIZE, chunk))    # f32
    b2 = jnp.broadcast_to(b2_ref[...], (HIDDEN_SIZE, chunk))    # f32
    bo = jnp.broadcast_to(bo_ref[...], (OUTPUT_SIZE, chunk))    # f32

    def body(c, carry):
        j = pl.multiple_of(c * chunk, 128)
        x = x_ref[:, pl.ds(j, chunk)]                           # (IN, chunk) bf16
        # hidden layer 1: Linear + ReLU (f32 MXU accumulation)
        h = jnp.dot(w1, x, preferred_element_type=jnp.float32)
        h = jnp.maximum(h + b1, 0.0)                            # (H, chunk) f32
        # hidden layer 2: Linear + ReLU
        h = jnp.dot(w2, h.astype(jnp.bfloat16),
                    preferred_element_type=jnp.float32)
        h = jnp.maximum(h + b2, 0.0)                            # (H, chunk) f32
        # output layer: Linear, no activation
        out = jnp.dot(wo, h.astype(jnp.bfloat16),
                      preferred_element_type=jnp.float32)
        o_ref[:, pl.ds(j, chunk)] = (out + bo).astype(o_ref.dtype)  # lane-dense store
        return carry

    lax.fori_loop(0, n_chunks, body, 0)


def _choose_tiling(batch, tb_max):
    """Pick (tb, b_padded): tb a multiple of CHUNK (or a small multiple of 128),
    padding kept small, and >=2 grid steps when the batch is big enough (v7x TCs)."""
    b128 = max(pl.cdiv(batch, 128) * 128, 128)        # minimal lane padding
    if b128 <= CHUNK:
        return b128, b128                             # one small tile; chunk == tile
    n_tiles = pl.cdiv(b128, tb_max)
    if n_tiles == 1 and b128 >= 2 * CHUNK:
        n_tiles = 2                                   # keep both v7x TensorCores busy
    tb = pl.cdiv(pl.cdiv(b128, n_tiles), CHUNK) * CHUNK
    b_padded = pl.cdiv(b128, tb) * tb
    return tb, b_padded


def _mlp_forward(x, params, *, tb=DEFAULT_TB, feature_major=False):
    """x: (B, INPUT_SIZE) f32 (or (INPUT_SIZE, B) if feature_major=True).
    params: PyTorch-native (out, in) weights, (out, 1) biases, f32."""
    if feature_major:
        batch = x.shape[1]
        xt = x                                        # already (INPUT_SIZE, B)
    else:
        batch = x.shape[0]
        xt = x.T                                      # fuses with pad/cast under jit
    xt = xt.astype(jnp.bfloat16)                      # halve HBM traffic of dominant stream

    tb_eff, b_padded = _choose_tiling(batch, tb)
    if b_padded != batch:
        xt = jnp.pad(xt, ((0, 0), (0, b_padded - batch)))
    grid = (b_padded // tb_eff,)

    # Weights to bf16 for the MXU inputs; biases stay f32 (added post-accumulation).
    w1 = params["w1"].astype(jnp.bfloat16)
    w2 = params["w2"].astype(jnp.bfloat16)
    wo = params["wo"].astype(jnp.bfloat16)
    b1, b2, bo = params["b1"], params["b2"], params["bo"]

    def resident(shape):                              # same block every grid step
        return pl.BlockSpec(shape, lambda i: (0, 0))

    flops = 2 * b_padded * (INPUT_SIZE * HIDDEN_SIZE
                            + HIDDEN_SIZE * HIDDEN_SIZE
                            + HIDDEN_SIZE * OUTPUT_SIZE)
    weight_bytes = (2 * (INPUT_SIZE * HIDDEN_SIZE + HIDDEN_SIZE * HIDDEN_SIZE
                         + HIDDEN_SIZE * OUTPUT_SIZE)
                    + 4 * (2 * HIDDEN_SIZE + OUTPUT_SIZE))
    bytes_accessed = b_padded * (INPUT_SIZE * 2 + OUTPUT_SIZE * 4) + weight_bytes

    out_t = pl.pallas_call(
        mlp_kernel,
        out_shape=jax.ShapeDtypeStruct((OUTPUT_SIZE, b_padded), jnp.float32),
        grid_spec=pltpu.PrefetchScalarGridSpec(
            num_scalar_prefetch=0,
            grid=grid,
            in_specs=[
                pl.BlockSpec((INPUT_SIZE, tb_eff), lambda i: (0, i)),   # x tile (streamed)
                resident((HIDDEN_SIZE, INPUT_SIZE)),                    # w1
                resident((HIDDEN_SIZE, 1)),                             # b1
                resident((HIDDEN_SIZE, HIDDEN_SIZE)),                   # w2
                resident((HIDDEN_SIZE, 1)),                             # b2
                resident((OUTPUT_SIZE, HIDDEN_SIZE)),                   # wo
                resident((OUTPUT_SIZE, 1)),                             # bo
            ],
            out_specs=pl.BlockSpec((OUTPUT_SIZE, tb_eff), lambda i: (0, i)),
        ),
        compiler_params=pltpu.CompilerParams(
            dimension_semantics=("parallel",),        # batch tiles split across TCs (v7x)
            # Inner chunk loop decouples VMEM from tb -> ~2 MB/step; 32 MiB is safe
            # on all of v5e / v6e / v7x with large headroom.
            vmem_limit_bytes=32 * 1024 * 1024,
        ),
        cost_estimate=pl.CostEstimate(
            flops=flops, transcendentals=0, bytes_accessed=bytes_accessed),
    )(xt, w1, b1, w2, b2, wo, bo)

    out = out_t[:, :batch]                            # drop lane padding
    return out if feature_major else out.T            # (B, OUTPUT_SIZE) or (OUTPUT_SIZE, B)


# jit the wrapper so transpose + pad + bf16 cast + output slice fuse around the call.
mlp_forward = jax.jit(_mlp_forward, static_argnames=("tb", "feature_major"))


def init_params(key):
    """Deterministic init mimicking PyTorch nn.Linear (uniform +-1/sqrt(fan_in)).
    Weights in PyTorch-native (out_features, in_features) layout; biases (out, 1)."""
    keys = jax.random.split(key, 6)

    def linear(kw, kb, fan_in, fan_out):
        bound = 1.0 / math.sqrt(fan_in)
        w = jax.random.uniform(kw, (fan_out, fan_in), jnp.float32, -bound, bound)
        b = jax.random.uniform(kb, (fan_out, 1), jnp.float32, -bound, bound)
        return w, b

    w1, b1 = linear(keys[0], keys[1], INPUT_SIZE, HIDDEN_SIZE)
    w2, b2 = linear(keys[2], keys[3], HIDDEN_SIZE, HIDDEN_SIZE)
    wo, bo = linear(keys[4], keys[5], HIDDEN_SIZE, OUTPUT_SIZE)
    return {"w1": w1, "b1": b1, "w2": w2, "b2": b2, "wo": wo, "bo": bo}


def mlp_ref(x, p):
    """Pure-JAX f32 reference matching the PyTorch forward (x: (B, in))."""
    h = jnp.maximum(x @ p["w1"].T + p["b1"].T, 0.0)
    h = jnp.maximum(h @ p["w2"].T + p["b2"].T, 0.0)
    return h @ p["wo"].T + p["bo"].T


if __name__ == "__main__":
    key = jax.random.PRNGKey(0)
    k_param, k_x1, k_x2 = jax.random.split(key, 3)
    params = init_params(k_param)

    # Tolerance loosened vs v1 because of the bf16 HBM/MXU boundary (f32 accumulation).
    ATOL = RTOL = 2e-2

    # Small-shape check: single 128-lane tile, single chunk.
    batch = 8
    x = jax.random.normal(k_x1, (batch, INPUT_SIZE), jnp.float32)
    out = jax.block_until_ready(mlp_forward(x, params))
    ref = mlp_ref(x, params)
    assert out.shape == (batch, OUTPUT_SIZE)
    assert jnp.allclose(out, ref, atol=ATOL, rtol=RTOL)

    # Multi-tile + inner-chunk-loop check: tb=2048 -> grid of 2, 2 chunks per tile.
    batch2 = 4096
    x2 = jax.random.normal(k_x2, (batch2, INPUT_SIZE), jnp.float32)
    out2 = jax.block_until_ready(mlp_forward(x2, params, tb=2048))
    ref2 = mlp_ref(x2, params)
    assert out2.shape == (batch2, OUTPUT_SIZE)
    assert jnp.allclose(out2, ref2, atol=ATOL, rtol=RTOL)

    # Feature-major fast path (caller already holds x as (INPUT_SIZE, B)): no transpose pass.
    out3 = jax.block_until_ready(
        mlp_forward(x2.T, params, tb=2048, feature_major=True))
    assert out3.shape == (OUTPUT_SIZE, batch2)
    assert jnp.allclose(out3.T, ref2, atol=ATOL, rtol=RTOL)

    print("KERNEL_OK")
</pallas_src>

<mosaic_0001>
module attributes {stable_mosaic.version = 11 : i64} {
  func.func @mlp_kernel(%arg0: i32, %arg1: memref<5x128xbf16, #tpu.memory_space<vmem>>, %arg2: memref<32x5xbf16, #tpu.memory_space<vmem>>, %arg3: memref<32x1xf32, #tpu.memory_space<vmem>>, %arg4: memref<32x32xbf16, #tpu.memory_space<vmem>>, %arg5: memref<32x1xf32, #tpu.memory_space<vmem>>, %arg6: memref<1x32xbf16, #tpu.memory_space<vmem>>, %arg7: memref<1x1xf32, #tpu.memory_space<vmem>>, %arg8: memref<1x128xf32, #tpu.memory_space<vmem>>) attributes {dimension_semantics = [#tpu.dimension_semantics<parallel>], iteration_bounds = array<i64: 1>, scalar_prefetch = 0 : i64, scratch_operands = 0 : i64, tpu.core_type = #tpu.core_type<tc>, window_params = [{transform_indices = @transform_0, window_bounds = array<i64: 5, 128>}, {pipeline_mode = #tpu.pipeline_mode<synchronous>, transform_indices = @transform_1, window_bounds = array<i64: 32, 5>}, {pipeline_mode = #tpu.pipeline_mode<synchronous>, transform_indices = @transform_2, window_bounds = array<i64: 32, 1>}, {pipeline_mode = #tpu.pipeline_mode<synchronous>, transform_indices = @transform_3, window_bounds = array<i64: 32, 32>}, {pipeline_mode = #tpu.pipeline_mode<synchronous>, transform_indices = @transform_4, window_bounds = array<i64: 32, 1>}, {pipeline_mode = #tpu.pipeline_mode<synchronous>, transform_indices = @transform_5, window_bounds = array<i64: 1, 32>}, {pipeline_mode = #tpu.pipeline_mode<synchronous>, transform_indices = @transform_6, window_bounds = array<i64: 1, 1>}, {transform_indices = @transform_7, window_bounds = array<i64: 1, 128>}]} {
    %c0 = arith.constant 0 : index
    %c0_0 = arith.constant 0 : index
    %0 = vector.load %arg2[%c0, %c0_0] : memref<32x5xbf16, #tpu.memory_space<vmem>>, vector<32x5xbf16>
    %c0_1 = arith.constant 0 : index
    %c0_2 = arith.constant 0 : index
    %1 = vector.load %arg4[%c0_1, %c0_2] : memref<32x32xbf16, #tpu.memory_space<vmem>>, vector<32x32xbf16>
    %c0_3 = arith.constant 0 : index
    %c0_4 = arith.constant 0 : index
    %2 = vector.load %arg6[%c0_3, %c0_4] : memref<1x32xbf16, #tpu.memory_space<vmem>>, vector<1x32xbf16>
    %c0_5 = arith.constant 0 : index
    %c0_6 = arith.constant 0 : index
    %3 = vector.load %arg3[%c0_5, %c0_6] : memref<32x1xf32, #tpu.memory_space<vmem>>, vector<32x1xf32>
    %4 = vector.shape_cast %3 : vector<32x1xf32> to vector<32x1xf32>
    %5 = vector.broadcast %4 : vector<32x1xf32> to vector<32x128xf32>
    %c0_7 = arith.constant 0 : index
    %c0_8 = arith.constant 0 : index
    %6 = vector.load %arg5[%c0_7, %c0_8] : memref<32x1xf32, #tpu.memory_space<vmem>>, vector<32x1xf32>
    %7 = vector.shape_cast %6 : vector<32x1xf32> to vector<32x1xf32>
    %8 = vector.broadcast %7 : vector<32x1xf32> to vector<32x128xf32>
    %c0_9 = arith.constant 0 : index
    %c0_10 = arith.constant 0 : index
    %9 = vector.load %arg7[%c0_9, %c0_10] : memref<1x1xf32, #tpu.memory_space<vmem>>, vector<1x1xf32>
    %10 = vector.shape_cast %9 : vector<1x1xf32> to vector<1x1xf32>
    %11 = vector.broadcast %10 : vector<1x1xf32> to vector<1x128xf32>
    %c0_i32 = arith.constant 0 : i32
    %c128_i32 = arith.constant 128 : i32
    %12 = arith.muli %c0_i32, %c128_i32 : i32
    %13 = tpu.assume_multiple %12, 128 : i32
    %c0_11 = arith.constant 0 : index
    %14 = arith.index_cast %13 : i32 to index
    %15 = vector.load %arg1[%c0_11, %14] : memref<5x128xbf16, #tpu.memory_space<vmem>>, vector<5x128xbf16>
    %cst = arith.constant dense<0.000000e+00> : vector<32x128xf32>
    %16 = tpu.matmul %0, %15, %cst {dimension_numbers = #tpu.dot_dimension_numbers<[1], [0], [0], [1], [0, 0, 1, 1], [], []>} : vector<32x5xbf16>, vector<5x128xbf16>, vector<32x128xf32> -> vector<32x128xf32>
    %17 = arith.addf %16, %5 : vector<32x128xf32>
    %cst_12 = arith.constant 0.000000e+00 : f32
    %18 = vector.broadcast %cst_12 : f32 to vector<32x128xf32>
    %19 = arith.maximumf %17, %18 : vector<32x128xf32>
    %20 = arith.truncf %19 : vector<32x128xf32> to vector<32x128xbf16>
    %cst_13 = arith.constant dense<0.000000e+00> : vector<32x128xf32>
    %21 = tpu.matmul %1, %20, %cst_13 {dimension_numbers = #tpu.dot_dimension_numbers<[1], [0], [0], [1], [0, 0, 1, 1], [], []>} : vector<32x32xbf16>, vector<32x128xbf16>, vector<32x128xf32> -> vector<32x128xf32>
    %22 = arith.addf %21, %8 : vector<32x128xf32>
    %cst_14 = arith.constant 0.000000e+00 : f32
    %23 = vector.broadcast %cst_14 : f32 to vector<32x128xf32>
    %24 = arith.maximumf %22, %23 : vector<32x128xf32>
    %25 = arith.truncf %24 : vector<32x128xf32> to vector<32x128xbf16>
    %cst_15 = arith.constant dense<0.000000e+00> : vector<1x128xf32>
    %26 = tpu.matmul %2, %25, %cst_15 {dimension_numbers = #tpu.dot_dimension_numbers<[1], [0], [0], [1], [0, 0, 1, 1], [], []>} : vector<1x32xbf16>, vector<32x128xbf16>, vector<1x128xf32> -> vector<1x128xf32>
    %27 = arith.addf %26, %11 : vector<1x128xf32>
    %c0_16 = arith.constant 0 : index
    %28 = arith.index_cast %13 : i32 to index
    %29 = vector.load %arg8[%c0_16, %28] : memref<1x128xf32, #tpu.memory_space<vmem>>, vector<1x128xf32>
    tpu.vector_store %arg8[%c0_16, %28], %27 {strides = array<i32>} : memref<1x128xf32, #tpu.memory_space<vmem>>, vector<1x128xf32>,
    %c1_i32 = arith.constant 1 : i32
    return
  }
  func.func @transform_0(%arg0: i32) -> (i32, i32) {
    %c0_i32 = arith.constant 0 : i32
    %c0_i32_0 = arith.constant 0 : i32
    return %c0_i32, %arg0 : i32, i32
  }
  func.func @transform_1(%arg0: i32) -> (i32, i32) {
    %c0_i32 = arith.constant 0 : i32
    %c0_i32_0 = arith.constant 0 : i32
    %c0_i32_1 = arith.constant 0 : i32
    return %c0_i32, %c0_i32_0 : i32, i32
  }
  func.func @transform_2(%arg0: i32) -> (i32, i32) {
    %c0_i32 = arith.constant 0 : i32
    %c0_i32_0 = arith.constant 0 : i32
    %c0_i32_1 = arith.constant 0 : i32
    return %c0_i32, %c0_i32_0 : i32, i32
  }
  func.func @transform_3(%arg0: i32) -> (i32, i32) {
    %c0_i32 = arith.constant 0 : i32
    %c0_i32_0 = arith.constant 0 : i32
    %c0_i32_1 = arith.constant 0 : i32
    return %c0_i32, %c0_i32_0 : i32, i32
  }
  func.func @transform_4(%arg0: i32) -> (i32, i32) {
    %c0_i32 = arith.constant 0 : i32
    %c0_i32_0 = arith.constant 0 : i32
    %c0_i32_1 = arith.constant 0 : i32
    return %c0_i32, %c0_i32_0 : i32, i32
  }
  func.func @transform_5(%arg0: i32) -> (i32, i32) {
    %c0_i32 = arith.constant 0 : i32
    %c0_i32_0 = arith.constant 0 : i32
    %c0_i32_1 = arith.constant 0 : i32
    return %c0_i32, %c0_i32_0 : i32, i32
  }
  func.func @transform_6(%arg0: i32) -> (i32, i32) {
    %c0_i32 = arith.constant 0 : i32
    %c0_i32_0 = arith.constant 0 : i32
    %c0_i32_1 = arith.constant 0 : i32
    return %c0_i32, %c0_i32_0 : i32, i32
  }
  func.func @transform_7(%arg0: i32) -> (i32, i32) {
    %c0_i32 = arith.constant 0 : i32
    %c0_i32_0 = arith.constant 0 : i32
    return %c0_i32, %arg0 : i32, i32
  }
}

</mosaic_0001>

<bundles_post_ra>
// kernel: _mlp_forward.1
= control target key start
LH: loop header
LB: loop body
LE: loop exit
PB: predicated region body
PF: predicated region fallthrough
CT: control target
= control target key end

     0   :  { %vm114_vm0 = vcmask 1041408   ;;  %vm115_vm1 = vcmask 1042432   ;;  %vm107_vm2 = vcmask 39936   ;;  %v347_v1 = vmov 65535   ;;  %s444_s0 = inlined_call_operand.vmem [shape: bf16[5,128], index: 0, kind: input, shape index: {}]   ;;  %s445_s1 = inlined_call_operand.vmem [shape: bf16[32,5], index: 1, kind: input, shape index: {}]   ;;  %s446_s2 = inlined_call_operand.vmem [shape: f32[32,1], index: 2, kind: input, shape index: {}]   ;;  %s447_s6 = inlined_call_operand.<no memory space> [shape: f32[1,1], index: 6, kind: input, shape index: {}]   ;;  %s448_s4 = inlined_call_operand.vmem [shape: f32[32,1], index: 4, kind: input, shape index: {}]   ;;  %s449_s3 = inlined_call_operand.vmem [shape: bf16[32,32], index: 3, kind: input, shape index: {}]   ;;  %s450_s5 = inlined_call_operand.vmem [shape: bf16[1,32], index: 5, kind: input, shape index: {}]   ;;  %s451_s7 = inlined_call_operand.vmem [shape: f32[1,128], index: 7, kind: output, shape index: {}]  }
   0x1   :  { %v96_v0 = vld [vmem:[%s444_s0] sm:$0x7]  ;;  %v116_v2 = vsel %vm114_vm0, 4294967295, %v347_v1  ;;  %v12_v4 = vstv %s447_s6  ;;  %v348_v8 = vmov 0   ;;  %v40_v9 = vld [vmem:[%s446_s2 + $0x10] sm:$0xff]  ;;  %v344_v10 = vld [vmem:[%s445_s1 + $0x8] sm:$0xff]   ;;  %v92_v58 = vlaneseq }
   0x2   :  { %v343_v3 = vld [vmem:[%s445_s1] sm:$0xff]   ;;  %v117_v5 = vsel %vm115_vm1, %v116_v2, 0  ;;  %13 = vst [vmem:[#allocation2] sm:$0x1] %v12_v4  ;;  %341 = vset.pattern.permute.xlu0 %v348_v8  ;;  %342 = vset.pattern.permute.xlu1 %v348_v8  ;;  %v39_v11 = vld [vmem:[%s446_s2 + $0x8] sm:$0xff]  ;;  %v41_v12 = vld [vmem:[%s446_s2 + $0x18] sm:$0xff] }
   0x3   :  { %v119_v6 = vand.u32 %v117_v5, %v96_v0  ;;  %317 = vmatprep.mubr.msk.bf16.mxu0 %vm107_vm2, %v343_v3  ;;  %v38_v7 = vld [vmem:[%s446_s2] sm:$0xff]  ;;  %54 = vperm.xlu1 %342, %v40_v9   ;;  %v63_v14 = vld [vmem:[%s448_s4 + $0x8] sm:$0xff]  ;;  %v64_v15 = vld [vmem:[%s448_s4 + $0x10] sm:$0xff]  ;;  %vm186_vm3 = vcmask 261120   ;;  %v349_v38 = vmov 0.0   ;;  %vm350_vm4 = vmmov 0  }
   0x4   :  { %44 = vperm.xlu0 %341, %v38_v7   ;;  %v62_v13 = vld [vmem:[%s448_s4] sm:$0xff]  ;;  %v65_v16 = vld [vmem:[%s448_s4 + $0x18] sm:$0xff]  ;;  %v346_v37 = vld [vmem:[%s449_s3 + $0x8] sm:$0xff]   ;;  %v93_v59 = vshrl.u32 %v92_v58, 7 }
   0x5   :  { %315 = vmatprep.subr.bf16.mxu0 %v119_v6  ;;  %v345_v18 = vld [vmem:[%s449_s3] sm:$0xff]  }
   0x6   :  { %316 = vmatpush3.bf16.msra.mxu0 %v119_v6  ;;  %325 = vmatprep.mubr.msk.bf16.mxu1 %vm186_vm3, %v345_v18  ;;  %v37_v57 = vld [vmem:[%s450_s5] sm:$0x1]  ;;  %v94_v60 = vsub.s32 0, %v93_v59 }
   0x7   :  { %59 = vperm.xlu1 %342, %v41_v12   ;;  %329 = vmatprep.subr.bf16.mxu0 %v349_v38 }
   0x8   :  { %49 = vperm.xlu0 %341, %v39_v11  }
   0x9   :  { %318 = vmatmul.mubr.msk.bf16.vlgmr.msra.gmra.mrb[0].mxu0 %vm107_vm2, %v344_v10  ;;  %v86_v17 = vld [vmem:[#allocation2] sm:$0x1] }
   0xa   :  { %333 = vmatprep.mubr.msk.bf16.mxu0 %vm350_vm4, %v349_v38 }
   0xb   :  { %73 = vperm.xlu1 %342, %v63_v14  }
   0xc   :  { %68 = vperm.xlu0 %341, %v62_v13  }
   0xf   :  { %83 = vperm.xlu1 %342, %v65_v16  }
  0x10   :  { %78 = vperm.xlu0 %341, %v64_v15  }
  0x14   :  { %89 = vperm.xlu0 %341, %v86_v17  }
  0x82   :  { %v55_v19 = vpop.permute.xlu1 %54 }
  0x83   :  { %v45_v20 = vpop.permute.xlu0 %44 }
  0x86   :  { %v60_v24 = vpop.permute.xlu1 %59 }
  0x87   :  { %v50_v27 = vpop.permute.xlu0 %49 }
  0x8a   :  { %v74_v40 = vpop.permute.xlu1 %73 }
  0x8b   :  { %v69_v39 = vpop.permute.xlu0 %68 }
  0x8e   :  { %v84_v45 = vpop.permute.xlu1 %83 }
  0x8f   :  { %v79_v41 = vpop.permute.xlu0 %78 }
  0x93   :  { %v90_v61 = vpop.permute.xlu0 %89 }
  0x94   :  { %v95_v62 = vrot.slane %v90_v61, %v94_v60 }
  0xdc   :  { %v319_v21 = vpop.f32.mrb[0].mxu0 }
  0xdd   :  { %v164_v22 = vadd.f32 %v319_v21, %v55_v19  ;;  %v155_v23 = vpop.f32.mrb[1].mxu0 }
  0xde   :  { %v156_v25 = vadd.f32 %v155_v23, %v45_v20  ;;  %v320_v26 = vpop.f32.mrb[2].mxu0 }
  0xdf   :  { %v167_v28 = vadd.f32 %v320_v26, %v60_v24  ;;  %v158_v29 = vpop.f32.mrb[3].mxu0  ;;  %v172_v31 = vmax.f32 %v164_v22, 0.0 }
  0xe0   :  { %v159_v30 = vadd.f32 %v158_v29, %v50_v27  ;;  %v170_v33 = vmax.f32 %v156_v25, 0.0 }
  0xe1   :  { %v173_v32 = vmax.f32 %v167_v28, 0.0 }
  0xe2   :  { %v171_v34 = vmax.f32 %v159_v30, 0.0 }
  0xe3   :  { %v175_v35 = vpack.c.bf16 %v173_v32, %v172_v31 }
  0xe4   :  { %v174_v36 = vpack.c.bf16 %v171_v34, %v170_v33 }
  0xe6   :  { %321 = vmatprep.subr.bf16.mxu1 %v174_v36 }
  0xe7   :  { %322 = vmatpush3.bf16.msra.mxu1 %v174_v36 }
  0xe8   :  { %323 = vmatprep.subr.bf16.mxu1 %v175_v35 }
  0xeb   :  { %324 = vmatpush3.bf16.msra.mxu1 %v175_v35 }
  0xee   :  { %326 = vmatmul.mubr.msk.bf16.vlgmr.msra.gmra.mrb[0].mxu1 %vm186_vm3, %v346_v37 }
 0x1c1   :  { %v327_v42 = vpop.f32.mrb[0].mxu1 }
 0x1c2   :  { %v236_v43 = vadd.f32 %v327_v42, %v79_v41  ;;  %v227_v44 = vpop.f32.mrb[1].mxu1 }
 0x1c3   :  { %v228_v46 = vadd.f32 %v227_v44, %v69_v39  ;;  %v328_v47 = vpop.f32.mrb[2].mxu1 }
 0x1c4   :  { %v239_v48 = vadd.f32 %v328_v47, %v84_v45  ;;  %v230_v49 = vpop.f32.mrb[3].mxu1  ;;  %v244_v51 = vmax.f32 %v236_v43, 0.0 }
 0x1c5   :  { %v231_v50 = vadd.f32 %v230_v49, %v74_v40  ;;  %v242_v53 = vmax.f32 %v228_v46, 0.0 }
 0x1c6   :  { %v245_v52 = vmax.f32 %v239_v48, 0.0 }
 0x1c7   :  { %v243_v54 = vmax.f32 %v231_v50, 0.0 }
 0x1c8   :  { %v247_v55 = vpack.c.bf16 %v245_v52, %v244_v51 }
 0x1c9   :  { %v246_v56 = vpack.c.bf16 %v243_v54, %v242_v53 }
 0x1cb   :  { %330 = vmatpush3.bf16.msra.mxu0 %v246_v56 }
 0x1cc   :  { %331 = vmatprep.subr.bf16.mxu0 %v349_v38 }
 0x1cf   :  { %332 = vmatpush3.bf16.msra.mxu0 %v247_v55 }
 0x1d2   :  { %334 = vmatmul.mubr.msk.bf16.vlgmr.msra.gmra.mrb[4].mxu0 %vm186_vm3, %v37_v57 }
 0x2a5   :  { %v285_v63 = vpop.f32.mrb[4].mxu0 }
 0x2a6   :  { %v286_v0 = vadd.f32 %v285_v63, %v95_v62  ;;  %v335_v1 = vpop.f32.mrb[5].mxu0 }
 0x2a7   :  { %v288_v2 = vpop.f32.mrb[6].mxu0 }
 0x2a8   :  { %291 = vst [vmem:[%s451_s7] sm:$0x1] %v286_v0  ;;  %v336_v3 = vpop.f32.mrb[7].mxu0 }

</bundles_post_ra>
